<compile_context>
chip_gen: v7x
topology: tpu7x:2x2x1
jax: 0.10.0
libtpu: 0.0.40
codegen_flags: <defaults>
</compile_context>

<pallas_src>
import functools

import numpy as np
import jax
import jax.numpy as jnp
from jax.experimental import pallas as pl
from jax.experimental.pallas import tpu as pltpu


def _round_up(v, m):
    return ((v + m - 1) // m) * m


def _node_model_kernel(first_blk_ref, nblk_ref,          # scalar prefetch (SMEM)
                       col_ref, x_ref, batch_ref, ea_rhs_ref, w1x_ref,
                       u_w1u_ref, b1_ref, w2_ref, b2_ref,
                       out_ref, acc_ref, *, cnt_col, exact_mean):
    i = pl.program_id(0)                      # node-tile index      ("parallel")
    j = pl.program_id(1)                      # per-tile edge block  ("arbitrary")
    n_steps = pl.num_programs(1)
    TM = acc_ref.shape[0]
    TE = col_ref.shape[1]

    @pl.when(j == 0)
    def _init():
        acc_ref[...] = jnp.zeros_like(acc_ref)

    # Only the first nblk[i] steps carry real edge blocks for this node tile; the
    # clamped duplicate blocks fetched for j >= nblk[i] are skipped here.
    @pl.when(j < nblk_ref[i])
    def _accumulate():
        # Edges of neighbouring node tiles sharing this block (and -1 padding)
        # fail the compare and contribute zero.
        local_col = col_ref[...] - i * TM                               # [1, TE]
        node_iota = jax.lax.broadcasted_iota(jnp.int32, (TM, TE), 0)    # [TM, TE]
        onehot_ne = (node_iota == local_col).astype(jnp.bfloat16)       # [TM, TE]
        # scatter-sum of [edge_attr @ w1e | 1] into nodes, on the MXU.
        acc_ref[...] += jnp.dot(onehot_ne, ea_rhs_ref[...],
                                preferred_element_type=jnp.float32)     # [TM, Hp]

    @pl.when(j == n_steps - 1)
    def _finalize():
        acc = acc_ref[...]                                              # [TM, Hp]
        cnt = acc[:, cnt_col:cnt_col + 1]                               # [TM, 1]
        denom = jnp.maximum(cnt, 1.0)
        inv = (1.0 / denom) if exact_mean else pl.reciprocal(denom, approx=True)
        edge_h = acc * inv        # (e_sum @ w1e) / max(cnt, 1); row-scale commutes

        # u[batch] @ w1u as a tiny one-hot matmul (B is small).
        Bp = u_w1u_ref.shape[0]
        graph_iota = jax.lax.broadcasted_iota(jnp.int32, (TM, Bp), 1)
        onehot_nb = (graph_iota == batch_ref[...]).astype(jnp.bfloat16)  # [TM, Bp]
        u_h = jnp.dot(onehot_nb, u_w1u_ref[...],
                      preferred_element_type=jnp.float32)

        x_h = jnp.dot(x_ref[...], w1x_ref[...],
                      preferred_element_type=jnp.float32)

        h = jnp.maximum(edge_h + u_h + x_h + b1_ref[...], 0.0)
        y = (jnp.dot(h.astype(jnp.bfloat16), w2_ref[...],
                     preferred_element_type=jnp.float32) + b2_ref[...])
        out_ref[...] = y.astype(out_ref.dtype)


def node_model_forward(x, edge_index, edge_attr, u, batch, params, *,
                       tm=512, te=2048, exact_mean=False, out_dtype=jnp.float32):
    """NodeModel forward. Requires concrete (eager) inputs: per-node-tile edge
    ranges are computed on the host (numpy) and fed via scalar prefetch."""
    N, f_x = x.shape
    E, f_e = edge_attr.shape
    B, f_u = u.shape
    w1, b1, w2, b2 = params["w1"], params["b1"], params["w2"], params["b2"]
    hidden = w1.shape[1]
    f_out = w2.shape[1]

    # Split W1 rows to match the concat order [x, e_agg, u[batch]].
    w1x = w1[:f_x]
    w1e = w1[f_x:f_x + f_e]
    w1u = w1[f_x + f_e:]

    Hp = _round_up(hidden + 1, 128)     # hidden + count column, lane-padded
    Op = _round_up(f_out, 128)          # lane-dense output width
    Bp = _round_up(B, 8)
    assert Hp >= hidden + 1             # count column lives at cnt_col == hidden

    # Node tile (multiple of 8).  If the whole graph would be a single tile but is
    # big enough, split into two tiles so v7x's two TensorCores both get work.
    n8 = _round_up(N, 8)
    TM = min(tm, n8)
    if n8 // TM < 2 and TM >= 16:
        TM = _round_up((TM + 1) // 2, 8)
    TE = min(te, _round_up(max(E, 1), 128))   # edge block (128-lane multiple)
    N_pad = _round_up(N, TM)
    E_pad = _round_up(max(E, 1), TE)
    num_node_tiles = N_pad // TM
    last_edge_blk = E_pad // TE - 1

    f32, bf16 = jnp.float32, jnp.bfloat16

    # ---- host-side: sort edges by destination, per-node-tile edge-block ranges.
    col_np = np.asarray(jax.device_get(edge_index))[1].astype(np.int64)
    perm_np = np.argsort(col_np, kind="stable")
    col_sorted_np = col_np[perm_np]
    tile_lo = np.arange(num_node_tiles, dtype=np.int64) * TM
    starts = np.searchsorted(col_sorted_np, tile_lo, side="left")
    ends = np.searchsorted(col_sorted_np, tile_lo + TM, side="left")
    has_edges = ends > starts
    first_blk_np = np.where(has_edges, starts // TE, 0).astype(np.int32)
    nblk_np = np.where(has_edges,
                       (ends - 1) // TE - starts // TE + 1, 0).astype(np.int32)
    max_blocks = max(int(nblk_np.max()), 1)
    first_blk = jnp.asarray(first_blk_np)
    nblk = jnp.asarray(nblk_np)
    perm = jnp.asarray(perm_np.astype(np.int32))

    # ---- operands (built directly in bf16; no f32 [E_pad, Hp] staging array).
    # Edge RHS = [edge_attr_sorted @ w1e | ones | zero-pad]: scatter-sum and the
    # per-node edge count both come out of one MXU matmul against the one-hot.
    ea_sorted = jnp.take(edge_attr.astype(bf16), perm, axis=0)            # [E, f_e]
    ea_w1e = jnp.dot(ea_sorted, w1e.astype(bf16),
                     preferred_element_type=f32).astype(bf16)             # [E, hidden]
    ea_rhs = jnp.concatenate([ea_w1e, jnp.ones((E, 1), bf16)], axis=1)
    ea_rhs = jnp.pad(ea_rhs, ((0, E_pad - E), (0, Hp - (hidden + 1))))

    # Sorted destination ids; padding = -1 so it matches no node.
    col_p = jnp.pad(jnp.asarray(col_sorted_np.astype(np.int32))[None, :],
                    ((0, 0), (0, E_pad - E)), constant_values=-1)

    # Node features (padded rows zero; their outputs are sliced off).
    x_p = jnp.pad(x.astype(bf16), ((0, N_pad - N), (0, 0)))
    batch_p = jnp.pad(batch.astype(jnp.int32)[:, None], ((0, N_pad - N), (0, 0)))

    u_w1u = jnp.dot(u.astype(bf16), w1u.astype(bf16),
                    preferred_element_type=f32).astype(bf16)              # [B, hidden]
    u_w1u_p = jnp.pad(u_w1u, ((0, Bp - B), (0, Hp - hidden)))

    w1x_p = jnp.pad(w1x.astype(bf16), ((0, 0), (0, Hp - hidden)))
    b1_p = jnp.pad(b1.astype(f32)[None, :], ((0, 0), (0, Hp - hidden)))
    # INVARIANT: rows >= hidden of w2_p must stay zero -- they kill the count
    # column and any padded-hidden garbage before it can reach the output.
    w2_p = jnp.pad(w2.astype(bf16), ((0, Hp - hidden), (0, Op - f_out)))
    b2_p = jnp.pad(b2.astype(f32)[None, :], ((0, 0), (0, Op - f_out)))

    # index_maps receive the scalar-prefetch refs positionally; clamp so the block
    # index never runs off the edge array (guarded duplicates are skipped in-kernel).
    def _ea_map(i, j, fb, nb):
        return (jnp.minimum(fb[i] + j, last_edge_blk), 0)

    def _col_map(i, j, fb, nb):
        return (0, jnp.minimum(fb[i] + j, last_edge_blk))

    kernel = functools.partial(_node_model_kernel, cnt_col=hidden,
                               exact_mean=exact_mean)

    out_pad = pl.pallas_call(
        kernel,
        out_shape=jax.ShapeDtypeStruct((N_pad, Op), out_dtype),
        grid_spec=pltpu.PrefetchScalarGridSpec(
            num_scalar_prefetch=2,
            grid=(num_node_tiles, max_blocks),
            in_specs=[
                pl.BlockSpec((1, TE), _col_map),                         # sorted col
                pl.BlockSpec((TM, f_x), lambda i, j, fb, nb: (i, 0)),    # x
                pl.BlockSpec((TM, 1), lambda i, j, fb, nb: (i, 0)),      # batch ids
                pl.BlockSpec((TE, Hp), _ea_map),                         # [ea@w1e | 1]
                pl.BlockSpec((f_x, Hp), lambda i, j, fb, nb: (0, 0)),    # w1x (padded)
                pl.BlockSpec((Bp, Hp), lambda i, j, fb, nb: (0, 0)),     # u@w1u (padded)
                pl.BlockSpec((1, Hp), lambda i, j, fb, nb: (0, 0)),      # b1 (padded)
                pl.BlockSpec((Hp, Op), lambda i, j, fb, nb: (0, 0)),     # w2 (padded)
                pl.BlockSpec((1, Op), lambda i, j, fb, nb: (0, 0)),      # b2 (padded)
            ],
            out_specs=pl.BlockSpec((TM, Op), lambda i, j, fb, nb: (i, 0)),
            scratch_shapes=[pltpu.VMEM((TM, Hp), jnp.float32)],
        ),
        compiler_params=pltpu.CompilerParams(
            dimension_semantics=("parallel", "arbitrary"),
            # Tiles above stay far below the v7x 64 MiB/TC budget; 48 MiB leaves
            # pipelining headroom on every generation without nearing v7x's cap.
            vmem_limit_bytes=48 * 1024 * 1024,
        ),
    )(first_blk, nblk, col_p, x_p, batch_p, ea_rhs, w1x_p, u_w1u_p, b1_p, w2_p, b2_p)

    return out_pad[:N, :f_out]


def node_model_reference(x, edge_index, edge_attr, u, batch, params):
    # Plain-JAX f32 reference matching torch_scatter.scatter_mean + cat + MLP.
    N = x.shape[0]
    col = edge_index[1]
    e_sum = jnp.zeros((N, edge_attr.shape[1]), jnp.float32).at[col].add(edge_attr)
    cnt = jnp.zeros((N,), jnp.float32).at[col].add(1.0)
    e_agg = e_sum / jnp.maximum(cnt, 1.0)[:, None]
    out = jnp.concatenate([x, e_agg, u[batch]], axis=1)
    h = jnp.maximum(out @ params["w1"] + params["b1"], 0.0)
    return h @ params["w2"] + params["b2"]


if __name__ == "__main__":
    # Small synthetic graph: N nodes, E directed edges, B graphs in the batch.
    N, E, B = 8, 16, 2
    f_e, f_x, f_u = 4, 8, 4
    hidden, f_x_out = 32, f_x

    key = jax.random.PRNGKey(0)
    kx, ke, ku, kc, kr, kw1, kb1, kw2, kb2 = jax.random.split(key, 9)

    x = jax.random.normal(kx, (N, f_x), jnp.float32)
    edge_attr = jax.random.normal(ke, (E, f_e), jnp.float32)
    u = jax.random.normal(ku, (B, f_u), jnp.float32)
    row = jax.random.randint(kr, (E,), 0, N, jnp.int32)
    col = jax.random.randint(kc, (E,), 0, N, jnp.int32)
    edge_index = jnp.stack([row, col], axis=0)                  # [2, E]
    batch = jnp.repeat(jnp.arange(B, dtype=jnp.int32), N // B)  # [N]

    # phi_x = Linear(f_x+f_e+f_u, hidden) -> ReLU -> Linear(hidden, f_x_out)
    f_in = f_x + f_e + f_u
    params = {
        "w1": jax.random.normal(kw1, (f_in, hidden), jnp.float32) * 0.1,
        "b1": jax.random.normal(kb1, (hidden,), jnp.float32) * 0.1,
        "w2": jax.random.normal(kw2, (hidden, f_x_out), jnp.float32) * 0.1,
        "b2": jax.random.normal(kb2, (f_x_out,), jnp.float32) * 0.1,
    }

    y = node_model_forward(x, edge_index, edge_attr, u, batch, params)
    y = jax.block_until_ready(y)

    y_ref = node_model_reference(x, edge_index, edge_attr, u, batch, params)
    assert y.shape == (N, f_x_out)
    # Tolerance loosened for bf16 MXU operands (accumulation is f32).
    assert jnp.allclose(y, y_ref, atol=2e-2, rtol=2e-2), "mismatch vs reference"

    print("KERNEL_OK")
</pallas_src>

<mosaic_0001>
module attributes {stable_mosaic.version = 11 : i64} {
  func.func @_node_model_kernel(%arg0: i32, %arg1: i32, %arg2: memref<1xi32, #tpu.memory_space<smem>>, %arg3: memref<1xi32, #tpu.memory_space<smem>>, %arg4: memref<1x128xi32, #tpu.memory_space<vmem>>, %arg5: memref<8x8xbf16, #tpu.memory_space<vmem>>, %arg6: memref<8x1xi32, #tpu.memory_space<vmem>>, %arg7: memref<128x128xbf16, #tpu.memory_space<vmem>>, %arg8: memref<8x128xbf16, #tpu.memory_space<vmem>>, %arg9: memref<8x128xbf16, #tpu.memory_space<vmem>>, %arg10: memref<1x128xf32, #tpu.memory_space<vmem>>, %arg11: memref<128x128xbf16, #tpu.memory_space<vmem>>, %arg12: memref<1x128xf32, #tpu.memory_space<vmem>>, %arg13: memref<8x128xf32, #tpu.memory_space<vmem>>, %arg14: memref<8x128xf32, #tpu.memory_space<vmem>>) attributes {dimension_semantics = [#tpu.dimension_semantics<parallel>, #tpu.dimension_semantics<arbitrary>], iteration_bounds = array<i64: 1, 1>, scalar_prefetch = 2 : i64, scratch_operands = 1 : i64, tpu.core_type = #tpu.core_type<tc>, window_params = [{transform_indices = @transform_0, window_bounds = array<i64: 1, 128>}, {transform_indices = @transform_1, window_bounds = array<i64: 8, 8>}, {transform_indices = @transform_2, window_bounds = array<i64: 8, 1>}, {transform_indices = @transform_3, window_bounds = array<i64: 128, 128>}, {pipeline_mode = #tpu.pipeline_mode<synchronous>, transform_indices = @transform_4, window_bounds = array<i64: 8, 128>}, {pipeline_mode = #tpu.pipeline_mode<synchronous>, transform_indices = @transform_5, window_bounds = array<i64: 8, 128>}, {pipeline_mode = #tpu.pipeline_mode<synchronous>, transform_indices = @transform_6, window_bounds = array<i64: 1, 128>}, {pipeline_mode = #tpu.pipeline_mode<synchronous>, transform_indices = @transform_7, window_bounds = array<i64: 128, 128>}, {pipeline_mode = #tpu.pipeline_mode<synchronous>, transform_indices = @transform_8, window_bounds = array<i64: 1, 128>}, {transform_indices = @transform_9, window_bounds = array<i64: 8, 128>}]} {
    %c0_i32 = arith.constant 0 : i32
    %0 = arith.cmpi eq, %arg1, %c0_i32 : i32
    %1 = arith.extui %0 : i1 to i32
    %c0_i32_0 = arith.constant 0 : i32
    %2 = arith.cmpi ne, %1, %c0_i32_0 : i32
    scf.if %2 {
      %cst = arith.constant 0.000000e+00 : f32
      %11 = vector.broadcast %cst : f32 to vector<8x128xf32>
      %c0 = arith.constant 0 : index
      %c0_4 = arith.constant 0 : index
      %12 = vector.load %arg14[%c0, %c0_4] : memref<8x128xf32, #tpu.memory_space<vmem>>, vector<8x128xf32>
      tpu.vector_store %arg14[%c0, %c0_4], %11 {strides = array<i32>} : memref<8x128xf32, #tpu.memory_space<vmem>>, vector<8x128xf32>,
    } else {
    }
    %3 = arith.index_cast %arg0 : i32 to index
    %4 = memref.load %arg3[%3] : memref<1xi32, #tpu.memory_space<smem>>
    %5 = arith.cmpi slt, %arg1, %4 : i32
    %6 = arith.extui %5 : i1 to i32
    %c0_i32_1 = arith.constant 0 : i32
    %7 = arith.cmpi ne, %6, %c0_i32_1 : i32
    scf.if %7 {
      %c0 = arith.constant 0 : index
      %c0_4 = arith.constant 0 : index
      %11 = vector.load %arg4[%c0, %c0_4] : memref<1x128xi32, #tpu.memory_space<vmem>>, vector<1x128xi32>
      %c8_i32 = arith.constant 8 : i32
      %12 = arith.muli %arg0, %c8_i32 : i32
      %13 = vector.broadcast %12 : i32 to vector<1x128xi32>
      %14 = arith.subi %11, %13 : vector<1x128xi32>
      %15 = tpu.iota {dimensions = array<i32: 0>} : vector<8x128xi32>
      %16 = vector.broadcast %14 : vector<1x128xi32> to vector<8x128xi32>
      %17 = arith.cmpi eq, %15, %16 : vector<8x128xi32>
      %18 = arith.extui %17 : vector<8x128xi1> to vector<8x128xi32>
      %19 = arith.sitofp %18 : vector<8x128xi32> to vector<8x128xf32>
      %20 = arith.truncf %19 : vector<8x128xf32> to vector<8x128xbf16>
      %c0_5 = arith.constant 0 : index
      %c0_6 = arith.constant 0 : index
      %21 = vector.load %arg14[%c0_5, %c0_6] : memref<8x128xf32, #tpu.memory_space<vmem>>, vector<8x128xf32>
      %c0_7 = arith.constant 0 : index
      %c0_8 = arith.constant 0 : index
      %22 = vector.load %arg7[%c0_7, %c0_8] : memref<128x128xbf16, #tpu.memory_space<vmem>>, vector<128x128xbf16>
      %cst = arith.constant dense<0.000000e+00> : vector<8x128xf32>
      %23 = tpu.matmul %20, %22, %cst {dimension_numbers = #tpu.dot_dimension_numbers<[1], [0], [0], [1], [0, 0, 1, 1], [], []>} : vector<8x128xbf16>, vector<128x128xbf16>, vector<8x128xf32> -> vector<8x128xf32>
      %24 = arith.addf %21, %23 : vector<8x128xf32>
      %c0_9 = arith.constant 0 : index
      %c0_10 = arith.constant 0 : index
      %25 = vector.load %arg14[%c0_9, %c0_10] : memref<8x128xf32, #tpu.memory_space<vmem>>, vector<8x128xf32>
      tpu.vector_store %arg14[%c0_9, %c0_10], %24 {strides = array<i32>} : memref<8x128xf32, #tpu.memory_space<vmem>>, vector<8x128xf32>,
    } else {
    }
    %c0_i32_2 = arith.constant 0 : i32
    %8 = arith.cmpi eq, %arg1, %c0_i32_2 : i32
    %9 = arith.extui %8 : i1 to i32
    %c0_i32_3 = arith.constant 0 : i32
    %10 = arith.cmpi ne, %9, %c0_i32_3 : i32
    scf.if %10 {
      %c0 = arith.constant 0 : index
      %c0_4 = arith.constant 0 : index
      %11 = vector.load %arg14[%c0, %c0_4] : memref<8x128xf32, #tpu.memory_space<vmem>>, vector<8x128xf32>
      %12 = vector.extract_strided_slice %11 {offsets = [0, 32], sizes = [8, 1], strides = [1, 1]} : vector<8x128xf32> to vector<8x1xf32>
      %cst = arith.constant 1.000000e+00 : f32
      %13 = vector.broadcast %cst : f32 to vector<8x1xf32>
      %14 = arith.maximumf %12, %13 : vector<8x1xf32>
      %15 = tpu.reciprocal %14 {approx = true} : vector<8x1xf32> -> vector<8x1xf32>
      %16 = vector.broadcast %15 : vector<8x1xf32> to vector<8x128xf32>
      %17 = arith.mulf %11, %16 : vector<8x128xf32>
      %18 = tpu.iota {dimensions = array<i32: 1>} : vector<8x8xi32>
      %c0_5 = arith.constant 0 : index
      %c0_6 = arith.constant 0 : index
      %19 = vector.load %arg6[%c0_5, %c0_6] : memref<8x1xi32, #tpu.memory_space<vmem>>, vector<8x1xi32>
      %20 = vector.broadcast %19 : vector<8x1xi32> to vector<8x8xi32>
      %21 = arith.cmpi eq, %18, %20 : vector<8x8xi32>
      %22 = arith.extui %21 : vector<8x8xi1> to vector<8x8xi32>
      %23 = arith.sitofp %22 : vector<8x8xi32> to vector<8x8xf32>
      %24 = arith.truncf %23 : vector<8x8xf32> to vector<8x8xbf16>
      %c0_7 = arith.constant 0 : index
      %c0_8 = arith.constant 0 : index
      %25 = vector.load %arg9[%c0_7, %c0_8] : memref<8x128xbf16, #tpu.memory_space<vmem>>, vector<8x128xbf16>
      %cst_9 = arith.constant dense<0.000000e+00> : vector<8x128xf32>
      %26 = tpu.matmul %24, %25, %cst_9 {dimension_numbers = #tpu.dot_dimension_numbers<[1], [0], [0], [1], [0, 0, 1, 1], [], []>} : vector<8x8xbf16>, vector<8x128xbf16>, vector<8x128xf32> -> vector<8x128xf32>
      %c0_10 = arith.constant 0 : index
      %c0_11 = arith.constant 0 : index
      %27 = vector.load %arg5[%c0_10, %c0_11] : memref<8x8xbf16, #tpu.memory_space<vmem>>, vector<8x8xbf16>
      %c0_12 = arith.constant 0 : index
      %c0_13 = arith.constant 0 : index
      %28 = vector.load %arg8[%c0_12, %c0_13] : memref<8x128xbf16, #tpu.memory_space<vmem>>, vector<8x128xbf16>
      %cst_14 = arith.constant dense<0.000000e+00> : vector<8x128xf32>
      %29 = tpu.matmul %27, %28, %cst_14 {dimension_numbers = #tpu.dot_dimension_numbers<[1], [0], [0], [1], [0, 0, 1, 1], [], []>} : vector<8x8xbf16>, vector<8x128xbf16>, vector<8x128xf32> -> vector<8x128xf32>
      %30 = arith.addf %17, %26 : vector<8x128xf32>
      %31 = arith.addf %30, %29 : vector<8x128xf32>
      %c0_15 = arith.constant 0 : index
      %c0_16 = arith.constant 0 : index
      %32 = vector.load %arg10[%c0_15, %c0_16] : memref<1x128xf32, #tpu.memory_space<vmem>>, vector<1x128xf32>
      %33 = vector.broadcast %32 : vector<1x128xf32> to vector<8x128xf32>
      %34 = arith.addf %31, %33 : vector<8x128xf32>
      %cst_17 = arith.constant 0.000000e+00 : f32
      %35 = vector.broadcast %cst_17 : f32 to vector<8x128xf32>
      %36 = arith.maximumf %34, %35 : vector<8x128xf32>
      %37 = arith.truncf %36 : vector<8x128xf32> to vector<8x128xbf16>
      %c0_18 = arith.constant 0 : index
      %c0_19 = arith.constant 0 : index
      %38 = vector.load %arg11[%c0_18, %c0_19] : memref<128x128xbf16, #tpu.memory_space<vmem>>, vector<128x128xbf16>
      %cst_20 = arith.constant dense<0.000000e+00> : vector<8x128xf32>
      %39 = tpu.matmul %37, %38, %cst_20 {dimension_numbers = #tpu.dot_dimension_numbers<[1], [0], [0], [1], [0, 0, 1, 1], [], []>} : vector<8x128xbf16>, vector<128x128xbf16>, vector<8x128xf32> -> vector<8x128xf32>
      %c0_21 = arith.constant 0 : index
      %c0_22 = arith.constant 0 : index
      %40 = vector.load %arg12[%c0_21, %c0_22] : memref<1x128xf32, #tpu.memory_space<vmem>>, vector<1x128xf32>
      %41 = vector.broadcast %40 : vector<1x128xf32> to vector<8x128xf32>
      %42 = arith.addf %39, %41 : vector<8x128xf32>
      %c0_23 = arith.constant 0 : index
      %c0_24 = arith.constant 0 : index
      %43 = vector.load %arg13[%c0_23, %c0_24] : memref<8x128xf32, #tpu.memory_space<vmem>>, vector<8x128xf32>
      tpu.vector_store %arg13[%c0_23, %c0_24], %42 {strides = array<i32>} : memref<8x128xf32, #tpu.memory_space<vmem>>, vector<8x128xf32>,
    } else {
    }
    return
  }
  func.func @transform_0(%arg0: i32, %arg1: i32, %arg2: memref<1xi32, #tpu.memory_space<smem>>, %arg3: memref<1xi32, #tpu.memory_space<smem>>) -> (i32, i32) {
    %0 = arith.index_cast %arg0 : i32 to index
    %1 = memref.load %arg2[%0] : memref<1xi32, #tpu.memory_space<smem>>
    %2 = arith.addi %1, %arg1 : i32
    %c0_i32 = arith.constant 0 : i32
    %3 = arith.minsi %2, %c0_i32 : i32
    %c0_i32_0 = arith.constant 0 : i32
    %c0_i32_1 = arith.constant 0 : i32
    return %c0_i32_0, %3 : i32, i32
  }
  func.func @transform_1(%arg0: i32, %arg1: i32, %arg2: memref<1xi32, #tpu.memory_space<smem>>, %arg3: memref<1xi32, #tpu.memory_space<smem>>) -> (i32, i32) {
    %c0_i32 = arith.constant 0 : i32
    %c0_i32_0 = arith.constant 0 : i32
    return %arg0, %c0_i32 : i32, i32
  }
  func.func @transform_2(%arg0: i32, %arg1: i32, %arg2: memref<1xi32, #tpu.memory_space<smem>>, %arg3: memref<1xi32, #tpu.memory_space<smem>>) -> (i32, i32) {
    %c0_i32 = arith.constant 0 : i32
    %c0_i32_0 = arith.constant 0 : i32
    return %arg0, %c0_i32 : i32, i32
  }
  func.func @transform_3(%arg0: i32, %arg1: i32, %arg2: memref<1xi32, #tpu.memory_space<smem>>, %arg3: memref<1xi32, #tpu.memory_space<smem>>) -> (i32, i32) {
    %0 = arith.index_cast %arg0 : i32 to index
    %1 = memref.load %arg2[%0] : memref<1xi32, #tpu.memory_space<smem>>
    %2 = arith.addi %1, %arg1 : i32
    %c0_i32 = arith.constant 0 : i32
    %3 = arith.minsi %2, %c0_i32 : i32
    %c0_i32_0 = arith.constant 0 : i32
    %c0_i32_1 = arith.constant 0 : i32
    return %3, %c0_i32_0 : i32, i32
  }
  func.func @transform_4(%arg0: i32, %arg1: i32, %arg2: memref<1xi32, #tpu.memory_space<smem>>, %arg3: memref<1xi32, #tpu.memory_space<smem>>) -> (i32, i32) {
    %c0_i32 = arith.constant 0 : i32
    %c0_i32_0 = arith.constant 0 : i32
    %c0_i32_1 = arith.constant 0 : i32
    return %c0_i32, %c0_i32_0 : i32, i32
  }
  func.func @transform_5(%arg0: i32, %arg1: i32, %arg2: memref<1xi32, #tpu.memory_space<smem>>, %arg3: memref<1xi32, #tpu.memory_space<smem>>) -> (i32, i32) {
    %c0_i32 = arith.constant 0 : i32
    %c0_i32_0 = arith.constant 0 : i32
    %c0_i32_1 = arith.constant 0 : i32
    return %c0_i32, %c0_i32_0 : i32, i32
  }
  func.func @transform_6(%arg0: i32, %arg1: i32, %arg2: memref<1xi32, #tpu.memory_space<smem>>, %arg3: memref<1xi32, #tpu.memory_space<smem>>) -> (i32, i32) {
    %c0_i32 = arith.constant 0 : i32
    %c0_i32_0 = arith.constant 0 : i32
    %c0_i32_1 = arith.constant 0 : i32
    return %c0_i32, %c0_i32_0 : i32, i32
  }
  func.func @transform_7(%arg0: i32, %arg1: i32, %arg2: memref<1xi32, #tpu.memory_space<smem>>, %arg3: memref<1xi32, #tpu.memory_space<smem>>) -> (i32, i32) {
    %c0_i32 = arith.constant 0 : i32
    %c0_i32_0 = arith.constant 0 : i32
    %c0_i32_1 = arith.constant 0 : i32
    return %c0_i32, %c0_i32_0 : i32, i32
  }
  func.func @transform_8(%arg0: i32, %arg1: i32, %arg2: memref<1xi32, #tpu.memory_space<smem>>, %arg3: memref<1xi32, #tpu.memory_space<smem>>) -> (i32, i32) {
    %c0_i32 = arith.constant 0 : i32
    %c0_i32_0 = arith.constant 0 : i32
    %c0_i32_1 = arith.constant 0 : i32
    return %c0_i32, %c0_i32_0 : i32, i32
  }
  func.func @transform_9(%arg0: i32, %arg1: i32, %arg2: memref<1xi32, #tpu.memory_space<smem>>, %arg3: memref<1xi32, #tpu.memory_space<smem>>) -> (i32, i32) {
    %c0_i32 = arith.constant 0 : i32
    %c0_i32_0 = arith.constant 0 : i32
    return %arg0, %c0_i32 : i32, i32
  }
}

</mosaic_0001>

<bundles_post_ra>
// kernel: tpu_custom_call.1
= control target key start
LH: loop header
LB: loop body
LE: loop exit
PB: predicated region body
PF: predicated region fallthrough
CT: control target
= control target key end

     0   :  { %18 = vsyncpa [#allocation7], 0  ;;  %s886_s0 = inlined_call_operand.<no memory space> [shape: s32[1], index: 0, kind: input, shape index: {}]   ;;  %s887_s1 = inlined_call_operand.<no memory space> [shape: s32[1], index: 1, kind: input, shape index: {}]   ;;  %s888_s2 = inlined_call_operand.vmem [shape: s32[1,128], index: 2, kind: input, shape index: {}]   ;;  %s889_s3 = inlined_call_operand.vmem [shape: bf16[8,8], index: 3, kind: input, shape index: {}]   ;;  %s890_s4 = inlined_call_operand.vmem [shape: s32[8,1], index: 4, kind: input, shape index: {}]   ;;  %s891_s5 = inlined_call_operand.hbm [shape: bf16[128,128], index: 5, kind: input, shape index: {}]   ;;  %s892_s6 = inlined_call_operand.vmem [shape: bf16[8,128], index: 6, kind: input, shape index: {}]   ;;  %s893_s7 = inlined_call_operand.vmem [shape: bf16[8,128], index: 7, kind: input, shape index: {}]   ;;  %s894_s8 = inlined_call_operand.vmem [shape: f32[1,128], index: 8, kind: input, shape index: {}]   ;;  %s895_s9 = inlined_call_operand.hbm [shape: bf16[128,128], index: 9, kind: input, shape index: {}]   ;;  %s896_s10 = inlined_call_operand.vmem [shape: f32[1,128], index: 10, kind: input, shape index: {}]   ;;  %s897_s11 = inlined_call_operand.hbm [shape: f32[8,128], index: 11, kind: output, shape index: {}]  }
   0x1   :  { %19 = vsyncpa [#allocation10], 0 }
   0x2   :  { %20 = vsyncpa [#allocation8], 0  ;;  %p42_p0 = scmp.lt.s32.totalorder %s886_s0, 0  ;;  %s716_s19 = smov [#allocation6]  }
   0x3   :  { %s50_s20 = sshll.u32 %s716_s19, 4  ;;  %s717_s30 = smov [#allocation9]   ;;  %s51_s20 = int_to_ptr.vmem [resolvable:$true] %s50_s20 }
   0x4   :  { %s798_s25 = scalar_select %p42_p0, %s886_s0, 0 }
   0x5   :  { %s68_s12 = sshll.u32 %s717_s30, 4  ;;  %s644_s16 = scalar_lea.hbm %s891_s5, 1024  ;;  %s69_s12 = int_to_ptr.vmem [resolvable:$true] %s68_s12 }
   0x6   :  { %s534_s26 = sshll.u32 %s798_s25, 10 }
   0x7   :  { %s49_s29 = scalar_lea.hbm %s891_s5, %s534_s26 }
   0x8   :  { %s642_s13 = scalar_lea.hbm %s49_s29, 1024  ;;  %p645_p2 = scmp.lt.u32.totalorder %s49_s29, %s891_s5 }
   0x9   :  { %p643_p1 = scmp.ne.s32.totalorder %s49_s29, %s642_s13  ;;  %p646_p3 = scmp.lt.u32.totalorder %s644_s16, %s642_s13 }
   0xa   :  { %p648_p5 = scmp.lt.u32.totalorder %s642_s13, %s49_s29 }
   0xb   :  { %p647_p4 = por %p646_p3, %p645_p2 }
   0xd   :  { %p649_p6 = por %p648_p5, %p647_p4 }
   0xf   :  { %p650_p7 = pnand %p649_p6, %p643_p1 }
  0x11   :  { %653 = shalt.err (!%p650_p7)
}
  0x12   :  { %s654_s19 = scalar_lea.vmem %s51_s20, 1024  ;;  %p659_p9 = scmp.lt.s32.totalorder %s51_s20, %s51_s20 }
  0x13   :  { %p655_p8 = scmp.ne.s32.totalorder %s51_s20, %s654_s19  ;;  %p660_p10 = scmp.lt.s32.totalorder %s654_s19, %s654_s19 }
  0x15   :  { %p661_p11 = por %p660_p10, %p659_p9 }
  0x17   :  { %p662_p12 = pnand %p661_p11, %p655_p8 }
  0x19   :  { %665 = shalt.err (!%p662_p12)
}
  0x1a   :  { %s718_s21 = smov 64   ;;  %s719_s22 = smov 4  }
  0x1b   :  { %56 = dma.hbm_to_vmem [thread:$0]  %s49_s29, 1024, %s51_s20, [#allocation7], %s718_s21, %s718_s21, %s719_s22  }
  0x1c   :  { %s666_s5 = scalar_lea.hbm %s895_s9, 1024 }
  0x1d   :  { %p667_p13 = scmp.ne.s32.totalorder %s895_s9, %s666_s5  ;;  %p670_p1 = scmp.lt.u32.totalorder %s666_s5, %s895_s9 }
  0x1f   :  { %p672_p2 = pnand %p670_p1, %p667_p13 }
  0x21   :  { %675 = shalt.err (!%p672_p2)
}
  0x22   :  { %s676_s13 = scalar_lea.vmem %s69_s12, 1024  ;;  %p681_p4 = scmp.lt.s32.totalorder %s69_s12, %s69_s12 }
  0x23   :  { %p677_p3 = scmp.ne.s32.totalorder %s69_s12, %s676_s13  ;;  %p682_p5 = scmp.lt.s32.totalorder %s676_s13, %s676_s13 }
  0x25   :  { %p683_p6 = por %p682_p5, %p681_p4 }
  0x27   :  { %p684_p7 = pnand %p683_p6, %p677_p3 }
  0x29   :  { %687 = shalt.err (!%p684_p7)
}
  0x2a   :  { %74 = dma.hbm_to_vmem [thread:$0]  %s895_s9, 1024, %s69_s12, [#allocation10], %s718_s21, %s718_s21, %s719_s22  }
  0x2b   :  { %710 = dma.done.wait [#allocation7], 1024  }
  0x2c   :  { %711 = vsyncadd [#allocation7], 4294966272 }
  0x2d   :  { %712 = dma.done.wait [#allocation10], 1024  }
  0x2e   :  { %713 = vsyncadd [#allocation10], 4294966272  ;;  %s899_s25 = smov (!%p42_p0, %s798_s25), 0  ;;  %v720_v0 = vmov 0.0   ;;  %p508_p8 = scmp.le.s32.totalorder %s887_s1, 0 }
  0x2f   :  { %111 = vst [vmem:[#allocation2] sm:$0xff] %v720_v0  ;;  %s96_s18 = scalar_lea.vmem %s888_s2, %s899_s25  ;;  %v621_v1 = vld [vmem:[#allocation6] sm:$0xff] (!%p508_p8)   ;;  %v721_v2 = vmov (!%p508_p8), 0.0   ;;  %v622_v3 = vld [vmem:[#allocation6 + $0x8] sm:$0xff] (!%p508_p8)   ;;  %vm722_vm0 = vmmov (!%p508_p8), 0   ;;  %v623_v4 = vld [vmem:[#allocation6 + $0x10] sm:$0xff] (!%p508_p8)   ;;  %v121_v8 = vlaneseq (!%p508_p8) }
  0x30   :  { %116 = sbr.rel (%p508_p8) target bundleno = 295 (0x127), region = 53  ;;  %557 = vmatprep.subr.bf16.mxu0 (!%p508_p8), %v721_v2  ;;  %573 = vmatprep.mubr.msk.bf16.mxu0 (!%p508_p8), %vm722_vm0, %v721_v2  ;;  %v624_v5 = vld [vmem:[#allocation6 + $0x18] sm:$0xff] (!%p508_p8)   ;;  %v625_v6 = vld [vmem:[#allocation6 + $0x20] sm:$0xff] (!%p508_p8)   ;;  %v626_v7 = vld [vmem:[#allocation6 + $0x28] sm:$0xff] (!%p508_p8)   ;;  %v723_v13 = vmov (!%p508_p8), 1.0|1.0  }
  0x31   :  { %558 = vmatpush3.bf16.msra.mxu0 (!%p508_p8), %v621_v1  ;;  %v627_v9 = vld [vmem:[#allocation6 + $0x30] sm:$0xff] (!%p508_p8)   ;;  %v122_v10 = vshrl.u32 (!%p508_p8), %v121_v8, 7  ;;  %v509_v11 = vld [vmem:[%s96_s18] ss:$0 sm:$0xff] (!%p508_p8) }
  0x32   :  { %559 = vmatprep.subr.bf16.mxu0 (!%p508_p8), %v721_v2  ;;  %v628_v12 = vld [vmem:[#allocation6 + $0x38] sm:$0xff] (!%p508_p8)  }
  0x33   :  { %vm127_vm1 = vcmp.eq.s32.totalorder (!%p508_p8), %v122_v10, %v509_v11 }
  0x34   :  { %vm519_vm2 = vmpackc.low (!%p508_p8), %vm127_vm1, %vm127_vm1 }
  0x35   :  { %560 = vmatpush3.bf16.msra.mxu0 (!%p508_p8), %v622_v3 }
  0x36   :  { %561 = vmatprep.subr.bf16.mxu0 (!%p508_p8), %v721_v2  ;;  %v131_v14 = vld [vmem:[#allocation2] sm:$0xff] (!%p508_p8) }
  0x39   :  { %562 = vmatpush3.bf16.msra.mxu0 %v623_v4 }
  0x3a   :  { %563 = vmatprep.subr.bf16.mxu0 %v721_v2 }
  0x3d   :  { %564 = vmatpush3.bf16.msra.mxu0 %v624_v5 }
  0x3e   :  { %565 = vmatprep.subr.bf16.mxu0 %v721_v2 }
  0x41   :  { %566 = vmatpush3.bf16.msra.mxu0 %v625_v6 }
  0x42   :  { %567 = vmatprep.subr.bf16.mxu0 %v721_v2 }
  0x45   :  { %568 = vmatpush3.bf16.msra.mxu0 %v626_v7 }
  0x46   :  { %569 = vmatprep.subr.bf16.mxu0 %v721_v2 }
  0x49   :  { %570 = vmatpush3.bf16.msra.mxu0 %v627_v9 }
  0x4a   :  { %571 = vmatprep.subr.bf16.mxu0 %v721_v2 }
  0x4d   :  { %572 = vmatpush3.bf16.msra.mxu0 %v628_v12 }
  0x50   :  { %574 = vmatmul.mubr.msk.bf16.vlgmr.msra.gmra.mrb[0].mxu0 %vm519_vm2, %v723_v13 }
 0x123   :  { %v230_v15 = vpop.f32.mrb[0].mxu0 }
 0x124   :  { %v236_v16 = vadd.f32 %v230_v15, %v131_v14  ;;  %v575_v17 = vpop.f32.mrb[1].mxu0 }
 0x125   :  { %v233_v18 = vpop.f32.mrb[2].mxu0 }
 0x126   :  { %237 = vst [vmem:[#allocation2] sm:$0xff] %v236_v16  ;;  %v576_v19 = vpop.f32.mrb[3].mxu0 }
 0x127 PF:  { %v252_v20 = vld [vmem:[%s890_s4] sm:$0xff]  ;;  %577 = vmatprep.subr.bf16.mxu1 %v720_v0  ;;  %589 = vmatprep.subr.bf16.mxu0 %v720_v0  ;;  %v724_v21 = vmov 0   ;;  %vm265_vm3 = vcmask 1043456   ;;  %vm725_vm4 = vmmov 0   ;;  %v632_v25 = vld [vmem:[#allocation9] sm:$0xff]   ;;  %v726_v26 = vmov 32  }
 0x128   :  { %629 = vset.pattern.permute.xlu0 %v724_v21  ;;  %v260_v22 = vld [vmem:[%s893_s7] sm:$0xf]  ;;  %579 = vmatprep.mubr.msk.bf16.mxu1 %vm725_vm4, %v720_v0  ;;  %v633_v28 = vld [vmem:[#allocation9 + $0x8] sm:$0xff]   ;;  %v634_v29 = vld [vmem:[#allocation9 + $0x10] sm:$0xff]   ;;  %v250_v32 = vlaneseq  ;;  %vm261_vm6 = vcmask 64512   ;;  %s727_s24 = smov [#allocation11]  }
 0x129   :  { %254 = vperm.xlu0 %629, %v252_v20   ;;  %v267_v23 = vsel %vm265_vm3, %v260_v22, 0  ;;  %605 = vmatprep.mubr.msk.bf16.mxu0 %vm725_vm4, %v720_v0  ;;  %v635_v30 = vld [vmem:[#allocation9 + $0x18] sm:$0xff]   ;;  %v636_v40 = vld [vmem:[#allocation9 + $0x20] sm:$0xff]   ;;  %v637_v41 = vld [vmem:[#allocation9 + $0x28] sm:$0xff]   ;;  %s487_s5 = sshll.u32 %s727_s24, 4  ;;  %s488_s5 = int_to_ptr.vmem [resolvable:$true] %s487_s5 }
 0x12a   :  { %578 = vmatpush3.bf16.msra.mxu1 %v267_v23  ;;  %590 = vmatpush3.bf16.msra.mxu0 %v632_v25  ;;  %v251_v33 = vand.u32 127, %v250_v32  ;;  %v310_v35 = vld [vmem:[%s892_s6] sm:$0xf]  ;;  %v638_v42 = vld [vmem:[#allocation9 + $0x30] sm:$0xff]   ;;  %p693_p9 = scmp.lt.s32.totalorder %s488_s5, %s488_s5 }
 0x12b   :  { %583 = vmatprep.subr.bf16.mxu1 %v720_v0  ;;  %591 = vmatprep.subr.bf16.mxu0 %v720_v0  ;;  %v315_v38 = vsel %vm265_vm3, %v310_v35, 0  ;;  %v309_v39 = vld [vmem:[%s889_s3] sm:$0xf] }
 0x12c   :  { %v639_v43 = vld [vmem:[#allocation9 + $0x38] sm:$0xff]  }
 0x12d   :  { %v241_v24 = vld [vmem:[#allocation2] sm:$0xff]  ;;  %630 = vset.pattern.permute.xlu0 %v726_v26 }
 0x12e   :  { %v242_v27 = vmax.f32 %v241_v24, 1.0  ;;  %592 = vmatpush3.bf16.msra.mxu0 %v633_v28  ;;  %v524_v52 = vld [vmem:[%s894_s8] ss:$0 sm:$0xff]  ;;  %s688_s8 = scalar_lea.vmem %s488_s5, 128 }
 0x12f   :  { %593 = vmatprep.subr.bf16.mxu0 %v720_v0  ;;  %v525_v60 = vld [vmem:[%s896_s10] ss:$0 sm:$0xff]  ;;  %p689_p0 = scmp.ne.s32.totalorder %s488_s5, %s688_s8  ;;  %p694_p10 = scmp.lt.s32.totalorder %s688_s8, %s688_s8 }
 0x130   :  { %640 = vrcp.f32 %v242_v27 }
 0x131   :  { %p695_p11 = por %p694_p10, %p693_p9 }
 0x132   :  { %594 = vmatpush3.bf16.msra.mxu0 %v634_v29 }
 0x133   :  { %595 = vmatprep.subr.bf16.mxu0 %v720_v0  ;;  %p696_p12 = pnand %p695_p11, %p689_p0 }
 0x136   :  { %596 = vmatpush3.bf16.msra.mxu0 %v635_v30 }
 0x137   :  { %597 = vmatprep.subr.bf16.mxu0 %v720_v0 }
 0x13a   :  { %v641_v31 = vpop.eup %640  ;;  %598 = vmatpush3.bf16.msra.mxu0 %v636_v40 }
 0x13b   :  { %246 = vperm.xlu0 %630, %v641_v31   ;;  %599 = vmatprep.subr.bf16.mxu0 %v720_v0 }
 0x13e   :  { %600 = vmatpush3.bf16.msra.mxu0 %v637_v41 }
 0x13f   :  { %631 = vset.pattern.permute.xlu0 %v724_v21  ;;  %601 = vmatprep.subr.bf16.mxu0 %v720_v0 }
 0x142   :  { %602 = vmatpush3.bf16.msra.mxu0 %v638_v42 }
 0x143   :  { %603 = vmatprep.subr.bf16.mxu0 %v720_v0 }
 0x146   :  { %604 = vmatpush3.bf16.msra.mxu0 %v639_v43 }
 0x1a8   :  { %v255_v34 = vpop.permute.xlu0 %254 }
 0x1a9   :  { %vm256_vm5 = vcmp.eq.s32.totalorder %v251_v33, %v255_v34 }
 0x1aa   :  { %v521_v36 = vsel %vm256_vm5, 1.0, %v720_v0 }
 0x1ab   :  { %v259_v37 = vpack.c.bf16 %v521_v36, %v521_v36 }
 0x1ad   :  { %580 = vmatmul.mubr.msk.bf16.vlgmr.msra.gmra.mrb[0].mxu1 %vm261_vm6, %v259_v37 }
 0x1ae   :  { %584 = vmatpush3.bf16.msra.mxu1 %v315_v38  ;;  %585 = vmatprep.mubr.msk.bf16.mxu1 %vm725_vm4, %v720_v0 }
 0x1b5   :  { %586 = vmatmul.mubr.msk.bf16.vlgmr.msra.gmra.mrb[4].mxu1 %vm261_vm6, %v309_v39 }
 0x1ba   :  { %v247_v44 = vpop.permute.xlu0 %246 }
 0x1bb   :  { %v249_v48 = vmul.f32 %v247_v44, %v241_v24 }
 0x280   :  { %v303_v45 = vpop.f32.mrb[0].mxu1 }
 0x281   :  { %v581_v46 = vpop.f32.mrb[1].mxu1  ;;  %v357_v50 = vadd.f32 %v303_v45, %v249_v48 }
 0x282   :  { %v306_v47 = vpop.f32.mrb[2].mxu1 }
 0x283   :  { %v582_v49 = vpop.f32.mrb[3].mxu1 }
 0x288   :  { %v351_v51 = vpop.f32.mrb[4].mxu1 }
 0x289   :  { %v358_v53 = vadd.f32 %v357_v50, %v351_v51  ;;  %v587_v54 = vpop.f32.mrb[5].mxu1 }
 0x28a   :  { %v354_v55 = vpop.f32.mrb[6].mxu1 }
 0x28b   :  { %v366_v56 = vadd.f32 %v524_v52, %v358_v53  ;;  %v588_v57 = vpop.f32.mrb[7].mxu1 }
 0x28d   :  { %v367_v58 = vmax.f32 %v366_v56, 0.0 }
 0x28f   :  { %v368_v59 = vpack.c.bf16 %v367_v58, %v367_v58 }
 0x291   :  { %606 = vmatmul.mubr.bf16.vlgmr.msra.gmra.mrb[0].mxu0 %v368_v59 }
 0x364   :  { %v474_v61 = vpop.f32.mrb[0].mxu0 }
 0x365   :  { %v475_v62 = vadd.f32 %v525_v60, %v474_v61  ;;  %v607_v63 = vpop.f32.mrb[1].mxu0 }
 0x366   :  { %v477_v0 = vpop.f32.mrb[2].mxu0 }
 0x367   :  { %480 = vst [vmem:[#allocation11] sm:$0xff] %v475_v62  ;;  %v608_v1 = vpop.f32.mrb[3].mxu0 }
 0x368   :  { %699 = shalt.err (!%p696_p12)
}
 0x369   :  { %s700_s10 = scalar_lea.hbm %s897_s11, 128 }
 0x36a   :  { %p701_p13 = scmp.ne.s32.totalorder %s897_s11, %s700_s10  ;;  %p704_p1 = scmp.lt.u32.totalorder %s700_s10, %s897_s11 }
 0x36c   :  { %p706_p2 = pnand %p704_p1, %p701_p13 }
 0x36e   :  { %709 = shalt.err (!%p706_p2)
}
 0x36f   :  { %490 = dma.vmem_to_hbm [thread:$0]  %s488_s5, 128, %s897_s11, [#allocation8]  }
 0x370   :  { %714 = dma.done.wait [#allocation8], 128  }
 0x371   :  { %715 = vsyncadd [#allocation8], 4294967168 }
 0x372   :  { %494 = vsyncpa [#allocation7], 1 }
 0x373   :  { %495 = vsyncpa [#allocation10], 1 }
 0x374   :  { %496 = vsyncpa [#allocation8], 1 }

</bundles_post_ra>
